<compile_context>
chip_gen: v5e
topology: v5e:2x2
jax: 0.10.0
libtpu: 0.0.40
codegen_flags: <defaults>
</compile_context>

<pallas_src>
import jax
import jax.numpy as jnp
from jax.experimental import pallas as pl
from jax.experimental.pallas import tpu as pltpu


def combiner_kernel(e1_ref, e2_ref, w1a_ref, w1b_ref, b1_ref, g_ref, b2d_ref,
                    out_ref):
    e1 = e1_ref[...]                                    # [tm, Dp] f32
    e2 = e2_ref[...]                                    # [tm, Dp] f32

    # att1 on the concatenated embedding, split into two MXU matmuls.  The
    # weights are block-diagonal so P packed logical rows stay independent.
    h = (jnp.dot(e1, w1a_ref[...], preferred_element_type=jnp.float32)
         + jnp.dot(e2, w1b_ref[...], preferred_element_type=jnp.float32)
         + b1_ref[...])                                 # [tm, Dp]

    # LeakyReLU(0.2)
    h = jnp.where(h > 0, h, 0.2 * h)

    # TODO(synk): F.dropout with training=True is stochastic; eval-mode
    # (identity) behavior is implemented here.

    # att2 + 2-way softmax, rewritten exactly as sigmoid of the logit
    # difference.  g_ref is block-diagonal with blocks outer(w2[0]-w2[1], 1),
    # so every lane of a logical row already holds that row's logit diff.
    d = (jnp.dot(h, g_ref[...], preferred_element_type=jnp.float32)
         + b2d_ref[0, 0])                               # [tm, Dp]
    a1 = 1.0 / (1.0 + jnp.exp(-d))                      # softmax weight of e1

    # out = e1*a1 + e2*(1-a1) = e2 + a1*(e1 - e2)
    out_ref[...] = (e2 + a1 * (e1 - e2)).astype(out_ref.dtype)


def combiner_forward(e1, e2, w1, b1, w2, b2, *, block_rows=2048):
    """e1, e2: [N, D].  w1: [D, 2D], b1: [D], w2: [2, D], b2: [2] (PyTorch
    Linear layout, y = x @ W.T + b).  Returns (final_embed, e1, e2)."""
    f32 = jnp.float32
    N, D = e1.shape

    # Lane packing: put P logical rows into one 128-lane row (free, contiguous
    # row-major reshape — no HBM copy).  Falls back to P=1 otherwise.
    P = 1
    if D <= 128 and 128 % D == 0 and N % (128 // D) == 0:
        P = 128 // D
    Np, Dp = N // P, D * P

    e1p = jnp.asarray(e1, f32).reshape(Np, Dp)
    e2p = jnp.asarray(e2, f32).reshape(Np, Dp)

    # Pre-transpose / block-diagonalize the weights (tiny, one-off).
    eye_p = jnp.eye(P, dtype=f32)
    w1a = jnp.kron(eye_p, jnp.asarray(w1[:, :D].T, f32))       # [Dp, Dp] (on e1)
    w1b = jnp.kron(eye_p, jnp.asarray(w1[:, D:].T, f32))       # [Dp, Dp] (on e2)
    b1p = jnp.tile(jnp.asarray(b1, f32), P).reshape(1, Dp)     # [1, Dp]
    w2f = jnp.asarray(w2, f32)
    b2f = jnp.asarray(b2, f32)
    w2d = w2f[0] - w2f[1]                                      # [D]
    g = jnp.kron(eye_p, jnp.outer(w2d, jnp.ones((D,), f32)))   # [Dp, Dp]
    b2d = (b2f[0] - b2f[1]).reshape(1, 1)                      # [1, 1] -> SMEM

    # Row tile (in packed rows).  Big tiles amortize the ~0.35 us/step grid
    # overhead; cap so large N still yields >= 8 grid steps (v7x: 2 TCs).
    sub = 8
    tgt = min(block_rows, max(256, pl.cdiv(Np, 8)))
    if Np <= tgt:
        tm = Np                      # single / full-extent block is always legal
    else:
        tm = pl.cdiv(tgt, sub) * sub
    grid = (pl.cdiv(Np, tm),)

    cost = pl.CostEstimate(
        flops=6 * Np * Dp * Dp + 8 * N * D,
        transcendentals=N * D,
        bytes_accessed=3 * N * D * 4 + 3 * Dp * Dp * 4,
    )

    outp = pl.pallas_call(
        combiner_kernel,
        out_shape=jax.ShapeDtypeStruct((Np, Dp), f32),
        grid=grid,
        in_specs=[
            pl.BlockSpec((tm, Dp), lambda i: (i, 0)),     # e1 (packed)
            pl.BlockSpec((tm, Dp), lambda i: (i, 0)),     # e2 (packed)
            pl.BlockSpec((Dp, Dp), lambda i: (0, 0)),     # W1a block-diag
            pl.BlockSpec((Dp, Dp), lambda i: (0, 0)),     # W1b block-diag
            pl.BlockSpec((1, Dp), lambda i: (0, 0)),      # b1 (tiled)
            pl.BlockSpec((Dp, Dp), lambda i: (0, 0)),     # att2 diff matrix
            pl.BlockSpec(memory_space=pltpu.MemorySpace.SMEM),  # b2[0]-b2[1]
        ],
        out_specs=pl.BlockSpec((tm, Dp), lambda i: (i, 0)),
        compiler_params=pltpu.CompilerParams(
            dimension_semantics=("parallel",)),
        cost_estimate=cost,
    )(e1p, e2p, w1a, w1b, b1p, g, b2d)

    final = outp.reshape(N, D)
    # forward returns (final_embed_matrix, embedding1, embedding2)
    return final, e1, e2


if __name__ == "__main__":
    key = jax.random.PRNGKey(0)
    N, D = 48, 32            # 48 (user, item) pairs, embedding_dim = 32
    NUM_U, NUM_I = 16, 16

    ks = jax.random.split(key, 9)

    # Synthetic deterministic "embedding1"/"embedding2" submodules:
    # embedding_k(nodes_u, nodes_i) = Uk[nodes_u] + Ik[nodes_i]  (plain-JAX glue)
    U1 = jax.random.normal(ks[0], (NUM_U, D), jnp.float32)
    I1 = jax.random.normal(ks[1], (NUM_I, D), jnp.float32)
    U2 = jax.random.normal(ks[2], (NUM_U, D), jnp.float32)
    I2 = jax.random.normal(ks[3], (NUM_I, D), jnp.float32)

    nodes_u = jax.random.randint(ks[4], (N,), 0, NUM_U)
    nodes_i = jax.random.randint(ks[5], (N,), 0, NUM_I)

    e1 = U1[nodes_u] + I1[nodes_i]
    e2 = U2[nodes_u] + I2[nodes_i]

    # att1: Linear(2D -> D), att2: Linear(D -> 2), deterministic init.
    w1 = jax.random.normal(ks[6], (D, 2 * D), jnp.float32) * 0.05
    b1 = jax.random.normal(ks[8], (D,), jnp.float32) * 0.05
    w2 = jax.random.normal(ks[7], (2, D), jnp.float32) * 0.05
    b2 = jax.random.normal(ks[8], (2,), jnp.float32) * 0.05

    final, out_e1, out_e2 = combiner_forward(e1, e2, w1, b1, w2, b2)
    jax.block_until_ready(final)

    # Pure-JAX float32 reference of the forward pass (eval mode).
    x = jnp.concatenate([e1, e2], axis=1)
    h = x @ w1.T + b1
    h = jnp.where(h > 0, h, 0.2 * h)
    logits = h @ w2.T + b2
    att = jax.nn.softmax(logits, axis=1)
    ref = e1 * att[:, 0:1] + e2 * att[:, 1:2]

    assert final.shape == (N, D)
    # Tolerance absorbs the (default-precision) MXU vs XLA f32-matmul passes;
    # the kernel math itself is an exact rewrite of the module.
    assert bool(jnp.allclose(final, ref, atol=1e-2, rtol=1e-2))
    assert bool(jnp.allclose(out_e1, e1)) and bool(jnp.allclose(out_e2, e2))

    print("KERNEL_OK")
</pallas_src>

<mosaic_0001>
module attributes {stable_mosaic.version = 11 : i64} {
  func.func @combiner_kernel(%arg0: i32, %arg1: memref<12x128xf32, #tpu.memory_space<vmem>>, %arg2: memref<12x128xf32, #tpu.memory_space<vmem>>, %arg3: memref<128x128xf32, #tpu.memory_space<vmem>>, %arg4: memref<128x128xf32, #tpu.memory_space<vmem>>, %arg5: memref<1x128xf32, #tpu.memory_space<vmem>>, %arg6: memref<128x128xf32, #tpu.memory_space<vmem>>, %arg7: memref<1x1xf32, #tpu.memory_space<smem>>, %arg8: memref<12x128xf32, #tpu.memory_space<vmem>>) attributes {dimension_semantics = [#tpu.dimension_semantics<parallel>], iteration_bounds = array<i64: 1>, scalar_prefetch = 0 : i64, scratch_operands = 0 : i64, tpu.core_type = #tpu.core_type<tc>, window_params = [{transform_indices = @transform_0, window_bounds = array<i64: 12, 128>}, {transform_indices = @transform_1, window_bounds = array<i64: 12, 128>}, {pipeline_mode = #tpu.pipeline_mode<synchronous>, transform_indices = @transform_2, window_bounds = array<i64: 128, 128>}, {pipeline_mode = #tpu.pipeline_mode<synchronous>, transform_indices = @transform_3, window_bounds = array<i64: 128, 128>}, {pipeline_mode = #tpu.pipeline_mode<synchronous>, transform_indices = @transform_4, window_bounds = array<i64: 1, 128>}, {pipeline_mode = #tpu.pipeline_mode<synchronous>, transform_indices = @transform_5, window_bounds = array<i64: 128, 128>}, {transform_indices = @transform_6, window_bounds = array<i64: 1, 1>}, {transform_indices = @transform_7, window_bounds = array<i64: 12, 128>}]} {
    %c0 = arith.constant 0 : index
    %c0_0 = arith.constant 0 : index
    %0 = vector.load %arg1[%c0, %c0_0] : memref<12x128xf32, #tpu.memory_space<vmem>>, vector<12x128xf32>
    %c0_1 = arith.constant 0 : index
    %c0_2 = arith.constant 0 : index
    %1 = vector.load %arg2[%c0_1, %c0_2] : memref<12x128xf32, #tpu.memory_space<vmem>>, vector<12x128xf32>
    %c0_3 = arith.constant 0 : index
    %c0_4 = arith.constant 0 : index
    %2 = vector.load %arg3[%c0_3, %c0_4] : memref<128x128xf32, #tpu.memory_space<vmem>>, vector<128x128xf32>
    %cst = arith.constant dense<0.000000e+00> : vector<12x128xf32>
    %3 = tpu.matmul %0, %2, %cst {dimension_numbers = #tpu.dot_dimension_numbers<[1], [0], [0], [1], [0, 0, 1, 1], [], []>} : vector<12x128xf32>, vector<128x128xf32>, vector<12x128xf32> -> vector<12x128xf32>
    %c0_5 = arith.constant 0 : index
    %c0_6 = arith.constant 0 : index
    %4 = vector.load %arg4[%c0_5, %c0_6] : memref<128x128xf32, #tpu.memory_space<vmem>>, vector<128x128xf32>
    %cst_7 = arith.constant dense<0.000000e+00> : vector<12x128xf32>
    %5 = tpu.matmul %1, %4, %cst_7 {dimension_numbers = #tpu.dot_dimension_numbers<[1], [0], [0], [1], [0, 0, 1, 1], [], []>} : vector<12x128xf32>, vector<128x128xf32>, vector<12x128xf32> -> vector<12x128xf32>
    %6 = arith.addf %3, %5 : vector<12x128xf32>
    %c0_8 = arith.constant 0 : index
    %c0_9 = arith.constant 0 : index
    %7 = vector.load %arg5[%c0_8, %c0_9] : memref<1x128xf32, #tpu.memory_space<vmem>>, vector<1x128xf32>
    %8 = vector.broadcast %7 : vector<1x128xf32> to vector<12x128xf32>
    %9 = arith.addf %6, %8 : vector<12x128xf32>
    %cst_10 = arith.constant 0.000000e+00 : f32
    %10 = vector.broadcast %cst_10 : f32 to vector<12x128xf32>
    %11 = arith.cmpf ogt, %9, %10 : vector<12x128xf32>
    %cst_11 = arith.constant 2.000000e-01 : f32
    %12 = vector.broadcast %cst_11 : f32 to vector<12x128xf32>
    %13 = arith.mulf %12, %9 : vector<12x128xf32>
    %14 = arith.select %11, %9, %13 : vector<12x128xi1>, vector<12x128xf32>
    %c0_12 = arith.constant 0 : index
    %c0_13 = arith.constant 0 : index
    %15 = vector.load %arg6[%c0_12, %c0_13] : memref<128x128xf32, #tpu.memory_space<vmem>>, vector<128x128xf32>
    %cst_14 = arith.constant dense<0.000000e+00> : vector<12x128xf32>
    %16 = tpu.matmul %14, %15, %cst_14 {dimension_numbers = #tpu.dot_dimension_numbers<[1], [0], [0], [1], [0, 0, 1, 1], [], []>} : vector<12x128xf32>, vector<128x128xf32>, vector<12x128xf32> -> vector<12x128xf32>
    %c0_15 = arith.constant 0 : index
    %c0_16 = arith.constant 0 : index
    %17 = memref.load %arg7[%c0_15, %c0_16] : memref<1x1xf32, #tpu.memory_space<smem>>
    %18 = vector.broadcast %17 : f32 to vector<12x128xf32>
    %19 = arith.addf %16, %18 : vector<12x128xf32>
    %cst_17 = arith.constant 0.000000e+00 : f32
    %20 = vector.broadcast %cst_17 : f32 to vector<12x128xf32>
    %21 = arith.subf %20, %19 : vector<12x128xf32>
    %22 = math.exp %21 : vector<12x128xf32>
    %cst_18 = arith.constant 1.000000e+00 : f32
    %23 = vector.broadcast %cst_18 : f32 to vector<12x128xf32>
    %24 = arith.addf %23, %22 : vector<12x128xf32>
    %cst_19 = arith.constant 1.000000e+00 : f32
    %25 = vector.broadcast %cst_19 : f32 to vector<12x128xf32>
    %26 = arith.divf %25, %24 : vector<12x128xf32>
    %27 = arith.subf %0, %1 : vector<12x128xf32>
    %28 = arith.mulf %26, %27 : vector<12x128xf32>
    %29 = arith.addf %1, %28 : vector<12x128xf32>
    %c0_20 = arith.constant 0 : index
    %c0_21 = arith.constant 0 : index
    %30 = vector.load %arg8[%c0_20, %c0_21] : memref<12x128xf32, #tpu.memory_space<vmem>>, vector<12x128xf32>
    tpu.vector_store %arg8[%c0_20, %c0_21], %29 {strides = array<i32>} : memref<12x128xf32, #tpu.memory_space<vmem>>, vector<12x128xf32>,
    return
  }
  func.func @transform_0(%arg0: i32) -> (i32, i32) {
    %c0_i32 = arith.constant 0 : i32
    %c0_i32_0 = arith.constant 0 : i32
    return %arg0, %c0_i32 : i32, i32
  }
  func.func @transform_1(%arg0: i32) -> (i32, i32) {
    %c0_i32 = arith.constant 0 : i32
    %c0_i32_0 = arith.constant 0 : i32
    return %arg0, %c0_i32 : i32, i32
  }
  func.func @transform_2(%arg0: i32) -> (i32, i32) {
    %c0_i32 = arith.constant 0 : i32
    %c0_i32_0 = arith.constant 0 : i32
    %c0_i32_1 = arith.constant 0 : i32
    return %c0_i32, %c0_i32_0 : i32, i32
  }
  func.func @transform_3(%arg0: i32) -> (i32, i32) {
    %c0_i32 = arith.constant 0 : i32
    %c0_i32_0 = arith.constant 0 : i32
    %c0_i32_1 = arith.constant 0 : i32
    return %c0_i32, %c0_i32_0 : i32, i32
  }
  func.func @transform_4(%arg0: i32) -> (i32, i32) {
    %c0_i32 = arith.constant 0 : i32
    %c0_i32_0 = arith.constant 0 : i32
    %c0_i32_1 = arith.constant 0 : i32
    return %c0_i32, %c0_i32_0 : i32, i32
  }
  func.func @transform_5(%arg0: i32) -> (i32, i32) {
    %c0_i32 = arith.constant 0 : i32
    %c0_i32_0 = arith.constant 0 : i32
    %c0_i32_1 = arith.constant 0 : i32
    return %c0_i32, %c0_i32_0 : i32, i32
  }
  func.func @transform_6(%arg0: i32) -> (i32, i32) {
    %c0_i32 = arith.constant 0 : i32
    %c0_i32_0 = arith.constant 0 : i32
    %c0_i32_1 = arith.constant 0 : i32
    return %c0_i32, %c0_i32_0 : i32, i32
  }
  func.func @transform_7(%arg0: i32) -> (i32, i32) {
    %c0_i32 = arith.constant 0 : i32
    %c0_i32_0 = arith.constant 0 : i32
    return %arg0, %c0_i32 : i32, i32
  }
}

</mosaic_0001>

<bundles_post_ra>
// kernel: tpu_custom_call.1
= control target key start
LH: loop header
LB: loop body
LE: loop exit
PB: predicated region body
PF: predicated region fallthrough
CT: control target
= control target key end

     0   :  { %13 = vsyncpa [#allocation4], 0  ;;  %s601_s0 = inlined_call_operand.hbm [shape: f32[12,128], index: 0, kind: input, shape index: {}]   ;;  %s602_s1 = inlined_call_operand.hbm [shape: f32[12,128], index: 1, kind: input, shape index: {}]   ;;  %s603_s2 = inlined_call_operand.hbm [shape: f32[128,128], index: 2, kind: input, shape index: {}]   ;;  %s604_s3 = inlined_call_operand.hbm [shape: f32[128,128], index: 3, kind: input, shape index: {}]   ;;  %s605_s4 = inlined_call_operand.vmem [shape: f32[1,128], index: 4, kind: input, shape index: {}]   ;;  %s606_s5 = inlined_call_operand.hbm [shape: f32[128,128], index: 5, kind: input, shape index: {}]   ;;  %s607_s6 = inlined_call_operand.<no memory space> [shape: f32[1,1], index: 6, kind: input, shape index: {}]   ;;  %s608_s7 = inlined_call_operand.hbm [shape: f32[12,128], index: 7, kind: output, shape index: {}]  }
   0x1   :  { %14 = vsyncpa [#allocation7], 0 }
   0x2   :  { %15 = vsyncpa [#allocation10], 0 }
   0x3   :  { %16 = vsyncpa [#allocation5], 0  ;;  %s34_s26 = sshll.u32 %s602_s1, 4  ;;  %s493_s27 = smov [#allocation6]   ;;  %s35_s26 = int_to_ptr.hbm [resolvable:$true] %s34_s26 }
   0x4   :  { %s36_s28 = sshll.u32 %s493_s27, 4  ;;  %s60_s8 = sshll.u32 %s604_s3, 4  ;;  %s37_s28 = int_to_ptr.vmem [resolvable:$true] %s36_s28  ;;  %s61_s8 = int_to_ptr.hbm [resolvable:$true] %s60_s8 }
   0x5   :  { %s494_s9 = smov 128   ;;  %s495_s10 = smov 8  }
   0x6   :  { %42 = dma.hbm_to_vmem [thread:$0]  %s35_s26, 256, %s37_s28, [#allocation7], %s494_s9, %s494_s9, %s495_s10  }
   0x7   :  { %s496_s11 = smov [#allocation9]   ;;  %s21_s1 = sshll.u32 %s601_s0, 4  ;;  %s22_s1 = int_to_ptr.hbm [resolvable:$true] %s21_s1 }
   0x8   :  { %s62_s12 = sshll.u32 %s496_s11, 4  ;;  %s47_s16 = sshll.u32 %s603_s2, 4  ;;  %s63_s12 = int_to_ptr.vmem [resolvable:$true] %s62_s12  ;;  %s48_s16 = int_to_ptr.hbm [resolvable:$true] %s47_s16 }
   0x9   :  { %68 = dma.hbm_to_vmem [thread:$0]  %s61_s8, 2048, %s63_s12, [#allocation10], %s494_s9, %s494_s9, %s495_s10  }
   0xa   :  { %s497_s17 = smov [#allocation3]   ;;  %s498_s19 = smov [#allocation8]  }
   0xb   :  { %s23_s18 = sshll.u32 %s497_s17, 4  ;;  %s49_s0 = sshll.u32 %s498_s19, 4  ;;  %s24_s18 = int_to_ptr.vmem [resolvable:$true] %s23_s18  ;;  %s50_s0 = int_to_ptr.vmem [resolvable:$true] %s49_s0 }
   0xc   :  { %29 = dma.hbm_to_vmem [thread:$0]  %s22_s1, 256, %s24_s18, [#allocation4], %s494_s9, %s494_s9, %s495_s10  }
   0xd   :  { %s75_s22 = sshll.u32 %s606_s5, 4  ;;  %s499_s2 = smov [#allocation11]   ;;  %s76_s22 = int_to_ptr.hbm [resolvable:$true] %s75_s22 }
   0xe   :  { %55 = dma.hbm_to_vmem [thread:$0]  %s48_s16, 2048, %s50_s0, [#allocation7], %s494_s9, %s494_s9, %s495_s10  }
   0xf   :  { %s77_s23 = sshll.u32 %s499_s2, 4  ;;  %s78_s23 = int_to_ptr.vmem [resolvable:$true] %s77_s23 }
  0x10   :  { %83 = dma.hbm_to_vmem [thread:$0]  %s76_s22, 2048, %s78_s23, [#allocation10], %s494_s9, %s494_s9, %s495_s10  }
  0x11   :  { %485 = dma.done.wait [#allocation4], 256  }
  0x12   :  { %486 = vsyncadd [#allocation4], 4294967040 }
  0x13   :  { %487 = dma.done.wait [#allocation7], 2304  }
  0x14   :  { %488 = vsyncadd [#allocation7], 4294964992 }
  0x15   :  { %489 = dma.done.wait [#allocation10], 4096  }
  0x16   :  { %490 = vsyncadd [#allocation10], 4294963200  ;;  %v141_v0 = vld [vmem:[#allocation9 + $0x78] sm:$0xff]  ;;  %v140_v2 = vld [vmem:[#allocation9 + $0x70] sm:$0xff]  ;;  %s293_s29 = sshll.u32 %s608_s7, 4  ;;  %s294_s29 = int_to_ptr.hbm [resolvable:$true] %s293_s29 }
  0x17   :  { %v125_v1 = vld [vmem:[#allocation8 + $0x78] sm:$0xff]  ;;  %142 = vmatpush.msra.mxu0 %v141_v0  ;;  %v124_v3 = vld [vmem:[#allocation8 + $0x70] sm:$0xff]  ;;  %308 = vmatpush.msra.mxu3 %v141_v0  ;;  %v139_v4 = vld [vmem:[#allocation9 + $0x68] sm:$0xff] }
  0x18   :  { %165 = vmatpush.msra.mxu1 %v125_v1  ;;  %v123_v5 = vld [vmem:[#allocation8 + $0x68] sm:$0xff]  ;;  %v138_v6 = vld [vmem:[#allocation9 + $0x60] sm:$0xff]  ;;  %v137_v8 = vld [vmem:[#allocation9 + $0x58] sm:$0xff]  ;;  %v217_v1 = vstv %s607_s6 }
  0x19   :  { %143 = vmatpush.msra.mxu0 %v140_v2  ;;  %309 = vmatpush.msra.mxu3 %v140_v2  ;;  %v122_v7 = vld [vmem:[#allocation8 + $0x60] sm:$0xff]  ;;  %v121_v9 = vld [vmem:[#allocation8 + $0x58] sm:$0xff]  ;;  %v136_v10 = vld [vmem:[#allocation9 + $0x50] sm:$0xff] }
  0x1a   :  { %166 = vmatpush.msra.mxu1 %v124_v3  ;;  %v120_v11 = vld [vmem:[#allocation8 + $0x50] sm:$0xff]  ;;  %v135_v12 = vld [vmem:[#allocation9 + $0x48] sm:$0xff]  ;;  %v134_v14 = vld [vmem:[#allocation9 + $0x40] sm:$0xff] }
  0x1b   :  { %144 = vmatpush.msra.mxu0 %v139_v4  ;;  %310 = vmatpush.msra.mxu3 %v139_v4  ;;  %v119_v13 = vld [vmem:[#allocation8 + $0x48] sm:$0xff]  ;;  %v118_v15 = vld [vmem:[#allocation8 + $0x40] sm:$0xff]  ;;  %v215_v16 = vld [vmem:[#allocation11 + $0x78] sm:$0xff] }
  0x1c   :  { %167 = vmatpush.msra.mxu1 %v123_v5  ;;  %v214_v17 = vld [vmem:[#allocation11 + $0x70] sm:$0xff]  ;;  %v133_v18 = vld [vmem:[#allocation9 + $0x38] sm:$0xff]  ;;  %218 = vmatpush.msra.mxu2 %v215_v16  ;;  %v213_v20 = vld [vmem:[#allocation11 + $0x68] sm:$0xff] }
  0x1d   :  { %145 = vmatpush.msra.mxu0 %v138_v6  ;;  %311 = vmatpush.msra.mxu3 %v138_v6  ;;  %v117_v19 = vld [vmem:[#allocation8 + $0x38] sm:$0xff]  ;;  %v132_v21 = vld [vmem:[#allocation9 + $0x30] sm:$0xff]  ;;  %v212_v23 = vld [vmem:[#allocation11 + $0x60] sm:$0xff] }
  0x1e   :  { %168 = vmatpush.msra.mxu1 %v122_v7  ;;  %v116_v22 = vld [vmem:[#allocation8 + $0x30] sm:$0xff]  ;;  %219 = vmatpush.msra.mxu2 %v214_v17  ;;  %v131_v24 = vld [vmem:[#allocation9 + $0x28] sm:$0xff]  ;;  %v211_v26 = vld [vmem:[#allocation11 + $0x58] sm:$0xff] }
  0x1f   :  { %146 = vmatpush.msra.mxu0 %v137_v8  ;;  %312 = vmatpush.msra.mxu3 %v137_v8  ;;  %v115_v25 = vld [vmem:[#allocation8 + $0x28] sm:$0xff]  ;;  %v130_v27 = vld [vmem:[#allocation9 + $0x20] sm:$0xff]  ;;  %v210_v29 = vld [vmem:[#allocation11 + $0x50] sm:$0xff] }
  0x20   :  { %169 = vmatpush.msra.mxu1 %v121_v9  ;;  %220 = vmatpush.msra.mxu2 %v213_v20  ;;  %v114_v28 = vld [vmem:[#allocation8 + $0x20] sm:$0xff]  ;;  %v129_v30 = vld [vmem:[#allocation9 + $0x18] sm:$0xff]  ;;  %v209_v32 = vld [vmem:[#allocation11 + $0x48] sm:$0xff] }
  0x21   :  { %147 = vmatpush.msra.mxu0 %v136_v10  ;;  %313 = vmatpush.msra.mxu3 %v136_v10  ;;  %v113_v31 = vld [vmem:[#allocation8 + $0x18] sm:$0xff]  ;;  %v128_v33 = vld [vmem:[#allocation9 + $0x10] sm:$0xff]  ;;  %v208_v35 = vld [vmem:[#allocation11 + $0x40] sm:$0xff] }
  0x22   :  { %170 = vmatpush.msra.mxu1 %v120_v11  ;;  %221 = vmatpush.msra.mxu2 %v212_v23  ;;  %v112_v34 = vld [vmem:[#allocation8 + $0x10] sm:$0xff]  ;;  %v127_v36 = vld [vmem:[#allocation9 + $0x8] sm:$0xff]  ;;  %v207_v38 = vld [vmem:[#allocation11 + $0x38] sm:$0xff] }
  0x23   :  { %148 = vmatpush.msra.mxu0 %v135_v12  ;;  %314 = vmatpush.msra.mxu3 %v135_v12  ;;  %v111_v37 = vld [vmem:[#allocation8 + $0x8] sm:$0xff]  ;;  %v126_v39 = vld [vmem:[#allocation9] sm:$0xff]  ;;  %v571_v41 = vld [vmem:[#allocation6] sm:$0xff] }
  0x24   :  { %171 = vmatpush.msra.mxu1 %v119_v13  ;;  %222 = vmatpush.msra.mxu2 %v211_v26  ;;  %v110_v40 = vld [vmem:[#allocation8] sm:$0xff]  ;;  %v206_v43 = vld [vmem:[#allocation11 + $0x30] sm:$0xff]  ;;  %v575_v44 = vld [vmem:[#allocation6 + $0x8] sm:$0xf] }
  0x25   :  { %149 = vmatpush.msra.mxu0 %v134_v14  ;;  %315 = vmatpush.msra.mxu3 %v134_v14  ;;  %v573_v42 = vld [vmem:[#allocation3] sm:$0xff]  ;;  %v205_v45 = vld [vmem:[#allocation11 + $0x28] sm:$0xff]  ;;  %v203_v48 = vld [vmem:[#allocation11 + $0x18] sm:$0xff] }
  0x26   :  { %172 = vmatpush.msra.mxu1 %v118_v15  ;;  %223 = vmatpush.msra.mxu2 %v210_v29  ;;  %v204_v46 = vld [vmem:[#allocation11 + $0x20] sm:$0xff]  ;;  %v580_v47 = vld [vmem:[#allocation3 + $0x8] sm:$0xf]  ;;  %v202_v49 = vld [vmem:[#allocation11 + $0x10] sm:$0xff]  ;;  %v279_v20 = vsub.f32 %v573_v42, %v571_v41 }
  0x27   :  { %150 = vmatpush.msra.mxu0 %v133_v18  ;;  %316 = vmatpush.msra.mxu3 %v133_v18  ;;  %v201_v50 = vld [vmem:[#allocation11 + $0x8] sm:$0xff]  ;;  %v200_v51 = vld [vmem:[#allocation11] sm:$0xff] }
  0x28   :  { %173 = vmatpush.msra.mxu1 %v117_v19  ;;  %224 = vmatpush.msra.mxu2 %v209_v32  ;;  %v332_v52 = vld [vmem:[%s605_s4] ss:$0 sm:$0xff]  ;;  %s500_s4 = smov [#allocation12]  }
  0x29   :  { %151 = vmatpush.msra.mxu0 %v132_v21  ;;  %317 = vmatpush.msra.mxu3 %v132_v21  ;;  %s291_s6 = sshll.u32 %s500_s4, 4  ;;  %s292_s6 = int_to_ptr.vmem [resolvable:$true] %s291_s6 }
  0x2a   :  { %174 = vmatpush.msra.mxu1 %v116_v22  ;;  %225 = vmatpush.msra.mxu2 %v208_v35 }
  0x2b   :  { %152 = vmatpush.msra.mxu0 %v131_v24  ;;  %318 = vmatpush.msra.mxu3 %v131_v24 }
  0x2c   :  { %175 = vmatpush.msra.mxu1 %v115_v25  ;;  %226 = vmatpush.msra.mxu2 %v207_v38 }
  0x2d   :  { %153 = vmatpush.msra.mxu0 %v130_v27  ;;  %319 = vmatpush.msra.mxu3 %v130_v27 }
  0x2e   :  { %176 = vmatpush.msra.mxu1 %v114_v28  ;;  %227 = vmatpush.msra.mxu2 %v206_v43 }
  0x2f   :  { %154 = vmatpush.msra.mxu0 %v129_v30  ;;  %320 = vmatpush.msra.mxu3 %v129_v30 }
  0x30   :  { %177 = vmatpush.msra.mxu1 %v113_v31  ;;  %228 = vmatpush.msra.mxu2 %v205_v45 }
  0x31   :  { %155 = vmatpush.msra.mxu0 %v128_v33  ;;  %321 = vmatpush.msra.mxu3 %v128_v33  ;;  %v280_v33 = vsub.f32 %v580_v47, %v575_v44 }
  0x32   :  { %178 = vmatpush.msra.mxu1 %v112_v34  ;;  %229 = vmatpush.msra.mxu2 %v204_v46 }
  0x33   :  { %156 = vmatpush.msra.mxu0 %v127_v36  ;;  %322 = vmatpush.msra.mxu3 %v127_v36 }
  0x34   :  { %179 = vmatpush.msra.mxu1 %v111_v37  ;;  %230 = vmatpush.msra.mxu2 %v203_v48 }
  0x35   :  { %157 = vmatpush.msra.mxu0 %v126_v39  ;;  %323 = vmatpush.msra.mxu3 %v126_v39 }
  0x36   :  { %180 = vmatpush.msra.mxu1 %v110_v40  ;;  %158 = vmatmul.f32.vlgmr.msra.gmra.mxu0 %v571_v41 }
  0x37   :  { %181 = vmatmul.f32.vlgmr.msra.gmra.mxu1 %v573_v42  ;;  %161 = vmatmul.f32.vlgmr.msra.gmra.mxu3 %v575_v44 }
  0x38   :  { %231 = vmatpush.msra.mxu2 %v202_v49 }
  0x3a   :  { %232 = vmatpush.msra.mxu2 %v201_v50 }
  0x3c   :  { %233 = vmatpush.msra.mxu2 %v200_v51 }
  0x3f   :  { %184 = vmatmul.f32.gmra.mxu1 %v580_v47 }
  0xb3   :  { %v159_v53 = vpop.f32.mrf.mxu0 }
  0xb4   :  { %v182_v54 = vpop.f32.mrf.mxu1 }
  0xb5   :  { %v183_v55 = vadd.f32 %v182_v54, %v159_v53 }
  0xb7   :  { %v192_v56 = vadd.f32 %v332_v52, %v183_v55 }
  0xb9   :  { %vm194_vm0 = vcmp.gt.f32.partialorder %v192_v56, 0.0  ;;  %v196_v57 = vmul.f32 0.2, %v192_v56 }
  0xba   :  { %v162_v59 = vpop.f32.mrf.mxu3 }
  0xbb   :  { %v198_v58 = vsel %vm194_vm0, %v192_v56, %v196_v57 }
  0xbc   :  { %v185_v60 = vpop.f32.mrf.mxu1  ;;  %234 = vmatmul.f32.vlgmr.msra.gmra.mxu2 %v198_v58 }
  0xbd   :  { %v186_v61 = vadd.f32 %v185_v60, %v162_v59 }
  0xbf   :  { %v193_v62 = vadd.f32 %v332_v52, %v186_v61 }
  0xc1   :  { %vm195_vm1 = vcmp.gt.f32.partialorder %v193_v62, 0.0  ;;  %v197_v63 = vmul.f32 0.2, %v193_v62 }
  0xc3   :  { %v199_v0 = vsel %vm195_vm1, %v193_v62, %v197_v63 }
  0xc4   :  { %237 = vmatmul.f32.gmra.mxu2 %v199_v0 }
 0x13f   :  { %v235_v2 = vpop.f32.mrf.mxu2 }
 0x140   :  { %v236_v3 = vadd.f32 %v235_v2, %v217_v1 }
 0x142   :  { %v241_v4 = vsub.f32 0.0, %v236_v3 }
 0x144   :  { %v243_v5 = vmul.f32 1.442695, %v241_v4 }
 0x146   :  { %333 = vpow2.f32 %v243_v5 }
 0x147   :  { %v238_v6 = vpop.f32.mrf.mxu2 }
 0x148   :  { %v239_v7 = vadd.f32 %v238_v6, %v217_v1 }
 0x14a   :  { %v242_v8 = vsub.f32 0.0, %v239_v7 }
 0x14c   :  { %v334_v9 = vpop.eup %333  ;;  %v245_v10 = vmul.f32 1.442695, %v242_v8 }
 0x14d   :  { %v247_v11 = vadd.f32 1.0, %v334_v9 }
 0x14e   :  { %335 = vpow2.f32 %v245_v10 }
 0x14f   :  { %337 = vrcp.f32 %v247_v11  ;;  %v260_v17 = vand.u32 2147483648, %v247_v11  ;;  %v258_v19 = vand.u32 2147483647, %v247_v11  ;;  %vm254_vm3 = vweird.f32 %v247_v11 }
 0x151   :  { %v261_v23 = vor.u32 1.1754944e-38, %v260_v17  ;;  %vm259_vm5 = vcmp.eq.f32.partialorder %v258_v19, 8.507059e+37 }
 0x154   :  { %v336_v12 = vpop.eup %335 }
 0x155   :  { %v338_v13 = vpop.eup %337  ;;  %v248_v14 = vadd.f32 1.0, %v336_v12 }
 0x156   :  { %v250_v15 = vmul.f32 %v338_v13, %v247_v11  ;;  %vm255_vm2 = vweird.f32 %v338_v13 }
 0x157   :  { %339 = vrcp.f32 %v248_v14  ;;  %vm256_vm4 = vmor %vm254_vm3, %vm255_vm2  ;;  %v275_v29 = vand.u32 2147483648, %v248_v14  ;;  %v273_v31 = vand.u32 2147483647, %v248_v14  ;;  %vm269_vm7 = vweird.f32 %v248_v14 }
 0x158   :  { %v251_v16 = vsub.f32 1.0, %v250_v15 }
 0x159   :  { %v276_v35 = vor.u32 1.1754944e-38, %v275_v29  ;;  %vm274_vm9 = vcmp.eq.f32.partialorder %v273_v31, 8.507059e+37 }
 0x15a   :  { %v252_v18 = vmul.f32 %v338_v13, %v251_v16 }
 0x15c   :  { %v253_v21 = vadd.f32 %v338_v13, %v252_v18 }
 0x15d   :  { %v340_v22 = vpop.eup %339 }
 0x15e   :  { %v265_v24 = vmul.f32 %v340_v22, %v248_v14  ;;  %v257_v25 = vsel %vm256_vm4, %v338_v13, %v253_v21  ;;  %vm270_vm6 = vweird.f32 %v340_v22 }
 0x15f   :  { %v262_v26 = vsel %vm259_vm5, %v261_v23, %v257_v25  ;;  %vm271_vm8 = vmor %vm269_vm7, %vm270_vm6 }
 0x160   :  { %v266_v27 = vsub.f32 1.0, %v265_v24  ;;  %v281_v28 = vmul.f32 %v279_v20, %v262_v26 }
 0x162   :  { %v267_v30 = vmul.f32 %v340_v22, %v266_v27  ;;  %v283_v32 = vadd.f32 %v281_v28, %v571_v41 }
 0x164   :  { %v268_v34 = vadd.f32 %v340_v22, %v267_v30  ;;  %285 = vst [vmem:[#allocation12] sm:$0xff] %v283_v32 }
 0x166   :  { %v272_v36 = vsel %vm271_vm8, %v340_v22, %v268_v34 }
 0x167   :  { %v277_v37 = vsel %vm274_vm9, %v276_v35, %v272_v36 }
 0x168   :  { %v282_v38 = vmul.f32 %v280_v33, %v277_v37 }
 0x16a   :  { %v284_v39 = vadd.f32 %v282_v38, %v575_v44 }
 0x16c   :  { %286 = vst [vmem:[#allocation12 + $0x8] sm:$0xf] %v284_v39 }
 0x16d   :  { %299 = dma.vmem_to_hbm [thread:$0]  %s292_s6, 256, %s294_s29, [#allocation5], %s494_s9, %s494_s9, %s495_s10  }
 0x16e   :  { %491 = dma.done.wait [#allocation5], 256  }
 0x16f   :  { %492 = vsyncadd [#allocation5], 4294967040 }
 0x170   :  { %304 = vsyncpa [#allocation4], 1 }
 0x171   :  { %305 = vsyncpa [#allocation7], 1 }
 0x172   :  { %306 = vsyncpa [#allocation10], 1 }
 0x173   :  { %307 = vsyncpa [#allocation5], 1 }

</bundles_post_ra>
